<compile_context>
chip_gen: v7x
topology: tpu7x:2x2x1
jax: 0.10.0
libtpu: 0.0.40
codegen_flags: <defaults>
</compile_context>

<pallas_src>
import functools

import jax
import jax.numpy as jnp
from jax.experimental import pallas as pl
from jax.experimental.pallas import tpu as pltpu

_LANE = 128  # TPU lane width (last-dim vreg extent)


def _mlp_encoder_kernel(x_ref, w1_ref, b1_ref, w2_ref, b2_ref, w3_ref, b3_ref,
                        o_ref):
    """Fused fc1 -> ReLU -> fc2 -> ReLU -> fc3 on one batch tile."""
    # Hoist bias loads once per tile (broadcasts are not CSE'd otherwise).
    b1 = b1_ref[...]
    b2 = b2_ref[...]
    b3 = b3_ref[...]

    x = x_ref[...]                                                  # (tb, F)
    h = jnp.dot(x, w1_ref[...], preferred_element_type=jnp.float32)
    h = jnp.maximum(h + b1, 0.0)                                    # ReLU
    h = jnp.dot(h, w2_ref[...], preferred_element_type=jnp.float32)
    h = jnp.maximum(h + b2, 0.0)                                    # ReLU
    h = jnp.dot(h, w3_ref[...], preferred_element_type=jnp.float32)
    # Direct store of the true (tb, enc_out) result: minimal HBM writeback,
    # contiguous full-row blocks in the output array.
    o_ref[...] = (h + b3).astype(o_ref.dtype)


def _round_up(v, m):
    return ((v + m - 1) // m) * m


def _pick_block_b(batch, feat, hidden, enc_out):
    """Batch-tile picker: ~512 rows, VMEM-aware, even grid steps for v7x."""
    # Per-grid-step VMEM estimate (f32, conservative):
    #   * double-buffered x tile + out tile (out lanes padded to 128 in VMEM)
    #   * double-buffered resident weights/biases
    #   * ~2 activation-sized temps
    weight_bytes = 2 * 4 * (feat * hidden + hidden * hidden
                            + hidden * enc_out + 2 * hidden + enc_out)
    per_row_bytes = 4 * (2 * feat + 2 * hidden + 2 * max(enc_out, _LANE))
    budget = 12 * 1024 * 1024            # < 16 MiB (v5e default scoped VMEM)
    vmem_rows = max(8, (budget - weight_bytes) // per_row_bytes)
    vmem_rows = (vmem_rows // 8) * 8

    if batch < 16:
        return batch                      # tiny batch: one whole-batch tile

    # Target 512 rows per tile (measured ~85% of HBM roofline), VMEM-clamped.
    bb = min(512, vmem_rows, _round_up(batch, 8))
    bb = max(8, (bb // 8) * 8)

    # v7x megacore: keep an even, balanced number of grid steps.
    steps = -(-batch // bb)
    if steps < 2:
        steps = 2
    if steps % 2:
        steps += 1
    bb = _round_up(-(-batch // steps), 8)
    return max(8, min(bb, vmem_rows, _round_up(batch, 8)))


@functools.partial(jax.jit, static_argnames=("block_b", "use_bf16"))
def mlp_encoder_forward(x, w1, b1, w2, b2, w3, b3, *, block_b=None,
                        use_bf16=False):
    """x: (B, SEQ_LEN, IN_DIM) float32 -> (B, ENC_OUT_DIM) float32."""
    batch = x.shape[0]
    x_flat = x.reshape(batch, -1)                 # == torch reshape(B, -1)
    feat = x_flat.shape[1]
    hidden = w1.shape[1]
    enc_out = w3.shape[1]

    # ---- batch tiling ----
    if block_b is None:
        block_b = _pick_block_b(batch, feat, hidden, enc_out)
    else:
        block_b = min(int(block_b), batch)
        if block_b < batch:                       # sublane (mult-of-8) guard
            block_b = max(8, _round_up(block_b, 8))
    grid = (pl.cdiv(batch, block_b),)

    # ---- dtypes (optional bf16 streaming; accumulation stays f32) ----
    in_dtype = jnp.bfloat16 if use_bf16 else x_flat.dtype
    x_in = x_flat.astype(in_dtype)
    w1_in = w1.astype(in_dtype)
    w2_in = w2.astype(in_dtype)
    w3_in = w3.astype(in_dtype)
    # Biases kept 2D (1, N) f32 so they broadcast cleanly inside the kernel.
    b1_2d = b1.reshape(1, hidden).astype(jnp.float32)
    b2_2d = b2.reshape(1, hidden).astype(jnp.float32)
    b3_2d = b3.reshape(1, enc_out).astype(jnp.float32)

    itemsize = 2 if use_bf16 else 4
    flops = 2 * batch * (feat * hidden + hidden * hidden + hidden * enc_out)
    bytes_accessed = (itemsize * (batch * feat + feat * hidden
                                  + hidden * hidden + hidden * enc_out)
                      + 4 * (batch * enc_out + 2 * hidden + enc_out))

    out = pl.pallas_call(
        _mlp_encoder_kernel,
        out_shape=jax.ShapeDtypeStruct((batch, enc_out), jnp.float32),
        grid_spec=pltpu.PrefetchScalarGridSpec(
            num_scalar_prefetch=0,
            grid=grid,
            in_specs=[
                # x: tiled over batch (the only streamed operand).
                pl.BlockSpec((block_b, feat), lambda i: (i, 0)),
                # Weights / biases: grid-invariant single blocks; the pipeline
                # DMAs them once and keeps them resident across grid steps.
                pl.BlockSpec((feat, hidden), lambda i: (0, 0)),
                pl.BlockSpec((1, hidden), lambda i: (0, 0)),
                pl.BlockSpec((hidden, hidden), lambda i: (0, 0)),
                pl.BlockSpec((1, hidden), lambda i: (0, 0)),
                pl.BlockSpec((hidden, enc_out), lambda i: (0, 0)),
                pl.BlockSpec((1, enc_out), lambda i: (0, 0)),
            ],
            # Unpadded output: each block is a contiguous run of full rows.
            out_specs=pl.BlockSpec((block_b, enc_out), lambda i: (i, 0)),
        ),
        compiler_params=pltpu.CompilerParams(
            dimension_semantics=("parallel",)),
        cost_estimate=pl.CostEstimate(
            flops=flops, transcendentals=0, bytes_accessed=bytes_accessed),
    )(x_in, w1_in, b1_2d, w2_in, b2_2d, w3_in, b3_2d)

    return out


def _init_linear(key, fan_in, fan_out):
    """Deterministic init mirroring nn.Linear's U(-1/sqrt(fan_in), 1/sqrt(fan_in))."""
    kw, kb = jax.random.split(key)
    bound = 1.0 / jnp.sqrt(float(fan_in))
    # Stored as (in, out) so kernel does x @ W (== torch x @ W.T).
    w = jax.random.uniform(kw, (fan_in, fan_out), jnp.float32, -bound, bound)
    b = jax.random.uniform(kb, (fan_out,), jnp.float32, -bound, bound)
    return w, b


if __name__ == "__main__":
    # Small hparams consistent with the module's forward.
    hparams = {
        "CATEGORICAL_DIM": 4,   # unused in forward
        "HIDDEN_DIM": 32,
        "ENC_OUT_DIM": 16,
        "RNN_LAYERS": 1,        # unused in forward
        "IN_DIM": 4,
        "SEQ_LEN": 8,
    }
    batch = 64                  # exercises an even 2-step parallel grid (2 x 32)
    seq_len, in_dim = hparams["SEQ_LEN"], hparams["IN_DIM"]
    hidden, enc_out = hparams["HIDDEN_DIM"], hparams["ENC_OUT_DIM"]
    flat = seq_len * in_dim

    key = jax.random.PRNGKey(0)
    kx, k1, k2, k3 = jax.random.split(key, 4)

    x = jax.random.normal(kx, (batch, seq_len, in_dim), jnp.float32)
    w1, b1 = _init_linear(k1, flat, hidden)
    w2, b2 = _init_linear(k2, hidden, hidden)
    w3, b3 = _init_linear(k3, hidden, enc_out)

    out = mlp_encoder_forward(x, w1, b1, w2, b2, w3, b3)
    out = jax.block_until_ready(out)

    # Pure-JAX reference check of the fused kernel.
    x_flat = x.reshape(batch, -1)
    ref = jnp.maximum(x_flat @ w1 + b1, 0.0)
    ref = jnp.maximum(ref @ w2 + b2, 0.0)
    ref = ref @ w3 + b3
    assert out.shape == (batch, enc_out)
    assert jnp.allclose(out, ref, atol=1e-5, rtol=1e-5), "mismatch vs reference"

    print("KERNEL_OK")
</pallas_src>

<mosaic_0001>
module attributes {stable_mosaic.version = 11 : i64} {
  func.func @_mlp_encoder_kernel(%arg0: i32, %arg1: memref<32x32xf32, #tpu.memory_space<vmem>>, %arg2: memref<32x32xf32, #tpu.memory_space<vmem>>, %arg3: memref<1x32xf32, #tpu.memory_space<vmem>>, %arg4: memref<32x32xf32, #tpu.memory_space<vmem>>, %arg5: memref<1x32xf32, #tpu.memory_space<vmem>>, %arg6: memref<32x16xf32, #tpu.memory_space<vmem>>, %arg7: memref<1x16xf32, #tpu.memory_space<vmem>>, %arg8: memref<32x16xf32, #tpu.memory_space<vmem>>) attributes {dimension_semantics = [#tpu.dimension_semantics<parallel>], iteration_bounds = array<i64: 2>, scalar_prefetch = 0 : i64, scratch_operands = 0 : i64, tpu.core_type = #tpu.core_type<tc>, window_params = [{transform_indices = @transform_0, window_bounds = array<i64: 32, 32>}, {pipeline_mode = #tpu.pipeline_mode<synchronous>, transform_indices = @transform_1, window_bounds = array<i64: 32, 32>}, {pipeline_mode = #tpu.pipeline_mode<synchronous>, transform_indices = @transform_2, window_bounds = array<i64: 1, 32>}, {pipeline_mode = #tpu.pipeline_mode<synchronous>, transform_indices = @transform_3, window_bounds = array<i64: 32, 32>}, {pipeline_mode = #tpu.pipeline_mode<synchronous>, transform_indices = @transform_4, window_bounds = array<i64: 1, 32>}, {pipeline_mode = #tpu.pipeline_mode<synchronous>, transform_indices = @transform_5, window_bounds = array<i64: 32, 16>}, {pipeline_mode = #tpu.pipeline_mode<synchronous>, transform_indices = @transform_6, window_bounds = array<i64: 1, 16>}, {transform_indices = @transform_7, window_bounds = array<i64: 32, 16>}]} {
    %c0 = arith.constant 0 : index
    %c0_0 = arith.constant 0 : index
    %0 = vector.load %arg3[%c0, %c0_0] : memref<1x32xf32, #tpu.memory_space<vmem>>, vector<1x32xf32>
    %c0_1 = arith.constant 0 : index
    %c0_2 = arith.constant 0 : index
    %1 = vector.load %arg5[%c0_1, %c0_2] : memref<1x32xf32, #tpu.memory_space<vmem>>, vector<1x32xf32>
    %c0_3 = arith.constant 0 : index
    %c0_4 = arith.constant 0 : index
    %2 = vector.load %arg7[%c0_3, %c0_4] : memref<1x16xf32, #tpu.memory_space<vmem>>, vector<1x16xf32>
    %c0_5 = arith.constant 0 : index
    %c0_6 = arith.constant 0 : index
    %3 = vector.load %arg1[%c0_5, %c0_6] : memref<32x32xf32, #tpu.memory_space<vmem>>, vector<32x32xf32>
    %c0_7 = arith.constant 0 : index
    %c0_8 = arith.constant 0 : index
    %4 = vector.load %arg2[%c0_7, %c0_8] : memref<32x32xf32, #tpu.memory_space<vmem>>, vector<32x32xf32>
    %cst = arith.constant dense<0.000000e+00> : vector<32x32xf32>
    %5 = tpu.matmul %3, %4, %cst {dimension_numbers = #tpu.dot_dimension_numbers<[1], [0], [0], [1], [0, 0, 1, 1], [], []>} : vector<32x32xf32>, vector<32x32xf32>, vector<32x32xf32> -> vector<32x32xf32>
    %6 = vector.broadcast %0 : vector<1x32xf32> to vector<32x32xf32>
    %7 = arith.addf %5, %6 : vector<32x32xf32>
    %cst_9 = arith.constant 0.000000e+00 : f32
    %8 = vector.broadcast %cst_9 : f32 to vector<32x32xf32>
    %9 = arith.maximumf %7, %8 : vector<32x32xf32>
    %c0_10 = arith.constant 0 : index
    %c0_11 = arith.constant 0 : index
    %10 = vector.load %arg4[%c0_10, %c0_11] : memref<32x32xf32, #tpu.memory_space<vmem>>, vector<32x32xf32>
    %cst_12 = arith.constant dense<0.000000e+00> : vector<32x32xf32>
    %11 = tpu.matmul %9, %10, %cst_12 {dimension_numbers = #tpu.dot_dimension_numbers<[1], [0], [0], [1], [0, 0, 1, 1], [], []>} : vector<32x32xf32>, vector<32x32xf32>, vector<32x32xf32> -> vector<32x32xf32>
    %12 = vector.broadcast %1 : vector<1x32xf32> to vector<32x32xf32>
    %13 = arith.addf %11, %12 : vector<32x32xf32>
    %cst_13 = arith.constant 0.000000e+00 : f32
    %14 = vector.broadcast %cst_13 : f32 to vector<32x32xf32>
    %15 = arith.maximumf %13, %14 : vector<32x32xf32>
    %c0_14 = arith.constant 0 : index
    %c0_15 = arith.constant 0 : index
    %16 = vector.load %arg6[%c0_14, %c0_15] : memref<32x16xf32, #tpu.memory_space<vmem>>, vector<32x16xf32>
    %cst_16 = arith.constant dense<0.000000e+00> : vector<32x16xf32>
    %17 = tpu.matmul %15, %16, %cst_16 {dimension_numbers = #tpu.dot_dimension_numbers<[1], [0], [0], [1], [0, 0, 1, 1], [], []>} : vector<32x32xf32>, vector<32x16xf32>, vector<32x16xf32> -> vector<32x16xf32>
    %18 = vector.broadcast %2 : vector<1x16xf32> to vector<32x16xf32>
    %19 = arith.addf %17, %18 : vector<32x16xf32>
    %c0_17 = arith.constant 0 : index
    %c0_18 = arith.constant 0 : index
    %20 = vector.load %arg8[%c0_17, %c0_18] : memref<32x16xf32, #tpu.memory_space<vmem>>, vector<32x16xf32>
    tpu.vector_store %arg8[%c0_17, %c0_18], %19 {strides = array<i32>} : memref<32x16xf32, #tpu.memory_space<vmem>>, vector<32x16xf32>,
    return
  }
  func.func @transform_0(%arg0: i32) -> (i32, i32) {
    %c0_i32 = arith.constant 0 : i32
    %c0_i32_0 = arith.constant 0 : i32
    return %arg0, %c0_i32 : i32, i32
  }
  func.func @transform_1(%arg0: i32) -> (i32, i32) {
    %c0_i32 = arith.constant 0 : i32
    %c0_i32_0 = arith.constant 0 : i32
    %c0_i32_1 = arith.constant 0 : i32
    return %c0_i32, %c0_i32_0 : i32, i32
  }
  func.func @transform_2(%arg0: i32) -> (i32, i32) {
    %c0_i32 = arith.constant 0 : i32
    %c0_i32_0 = arith.constant 0 : i32
    %c0_i32_1 = arith.constant 0 : i32
    return %c0_i32, %c0_i32_0 : i32, i32
  }
  func.func @transform_3(%arg0: i32) -> (i32, i32) {
    %c0_i32 = arith.constant 0 : i32
    %c0_i32_0 = arith.constant 0 : i32
    %c0_i32_1 = arith.constant 0 : i32
    return %c0_i32, %c0_i32_0 : i32, i32
  }
  func.func @transform_4(%arg0: i32) -> (i32, i32) {
    %c0_i32 = arith.constant 0 : i32
    %c0_i32_0 = arith.constant 0 : i32
    %c0_i32_1 = arith.constant 0 : i32
    return %c0_i32, %c0_i32_0 : i32, i32
  }
  func.func @transform_5(%arg0: i32) -> (i32, i32) {
    %c0_i32 = arith.constant 0 : i32
    %c0_i32_0 = arith.constant 0 : i32
    %c0_i32_1 = arith.constant 0 : i32
    return %c0_i32, %c0_i32_0 : i32, i32
  }
  func.func @transform_6(%arg0: i32) -> (i32, i32) {
    %c0_i32 = arith.constant 0 : i32
    %c0_i32_0 = arith.constant 0 : i32
    %c0_i32_1 = arith.constant 0 : i32
    return %c0_i32, %c0_i32_0 : i32, i32
  }
  func.func @transform_7(%arg0: i32) -> (i32, i32) {
    %c0_i32 = arith.constant 0 : i32
    %c0_i32_0 = arith.constant 0 : i32
    return %arg0, %c0_i32 : i32, i32
  }
}

</mosaic_0001>

<bundles_post_ra>
// kernel: mlp_encoder_forward.1
= control target key start
LH: loop header
LB: loop body
LE: loop exit
PB: predicated region body
PF: predicated region fallthrough
CT: control target
= control target key end

     0   :  { %s856_s24 = smov 0   ;;  %s937_s0 = inlined_call_operand.vmem [shape: f32[64,32], index: 0, kind: input, shape index: {}]   ;;  %s938_s1 = inlined_call_operand.vmem [shape: f32[32,32], index: 1, kind: input, shape index: {}]   ;;  %s939_s2 = inlined_call_operand.vmem [shape: f32[1,32], index: 2, kind: input, shape index: {}]   ;;  %s940_s3 = inlined_call_operand.vmem [shape: f32[32,32], index: 3, kind: input, shape index: {}]   ;;  %s941_s4 = inlined_call_operand.vmem [shape: f32[1,32], index: 4, kind: input, shape index: {}]   ;;  %s942_s5 = inlined_call_operand.vmem [shape: f32[32,16], index: 5, kind: input, shape index: {}]   ;;  %s943_s6 = inlined_call_operand.vmem [shape: f32[1,16], index: 6, kind: input, shape index: {}]   ;;  %s944_s7 = inlined_call_operand.vmem [shape: f32[64,16], index: 7, kind: output, shape index: {}]  }
   0x1 LB: > { %s680_s25 = sadd.s32 4294967295, %s814_s24   ;;  %p684_p0 = scmp.ge.s32.totalorder %s814_s24, 1  ;;  %s814_s24 = sphi %s856_s24, %s17_s24  }
   0x2   : > { %p238_p1 = scmp.lt.s32.totalorder %s814_s24, 3 }
   0x4   : > { %p239_p2 = pnand %p684_p0, %p238_p1 }
   0x5   : > { %v289_v0 = vld [vmem:[%s938_s1] sm:$0xff] (!%p239_p2)  ;;  %v290_v1 = vld [vmem:[%s938_s1 + $0x8] sm:$0xff] (!%p239_p2)  ;;  %v291_v2 = vld [vmem:[%s938_s1 + $0x10] sm:$0xff] (!%p239_p2)  ;;  %s685_s9 = sshll.u32 (!%p239_p2), %s680_s25, 2  ;;  %vm299_vm0 = vcmask (!%p239_p2), 261120   ;;  %vm619_vm1 = vcmask (!%p239_p2), 130048  }
   0x6   : > { %242 = sbr.rel (%p239_p2) target bundleno = 674 (0x2a2), region = 48  ;;  %v772_v3 = vpack.c.bf16 (!%p239_p2), %v290_v1, %v289_v0  ;;  %v292_v4 = vld [vmem:[%s938_s1 + $0x18] sm:$0xff] (!%p239_p2)  ;;  %p271_p3 = scmp.lt.s32.totalorder (!%p239_p2), %s685_s9, 7  ;;  %v401_v5 = vld [vmem:[%s940_s3] sm:$0xff] (!%p239_p2)  ;;  %v402_v6 = vld [vmem:[%s940_s3 + $0x8] sm:$0xff] (!%p239_p2) }
   0x7   : > { %v776_v7 = vpack.c.bf16 (!%p239_p2), %v292_v4, %v291_v2  ;;  %v780_v8 = vpack.c.bf16 (!%p239_p2), %v402_v6, %v401_v5  ;;  %v403_v13 = vld [vmem:[%s940_s3 + $0x10] sm:$0xff] (!%p239_p2)  ;;  %v404_v14 = vld [vmem:[%s940_s3 + $0x18] sm:$0xff] (!%p239_p2)  ;;  %v512_v16 = vld [vmem:[%s942_s5] sm:$0xff] (!%p239_p2) }
   0x8   : > { %773 = vmatprep.subr.bf16.mxu0 (!%p239_p2), %v772_v3  ;;  %v784_v15 = vpack.c.bf16 (!%p239_p2), %v404_v14, %v403_v13  ;;  %v513_v17 = vld [vmem:[%s942_s5 + $0x8] sm:$0xff] (!%p239_p2)  ;;  %v689_v19 = vld [vmem:[%s939_s2] ss:$0 sm:$0xff] (!%p239_p2)  ;;  %v514_v32 = vld [vmem:[%s942_s5 + $0x10] sm:$0xff] (!%p239_p2) }
   0x9   : > { %775 = vmatpush3.bf16.msra.mxu0 (!%p239_p2), %v772_v3  ;;  %781 = vmatprep.subr.bf16.mxu1 (!%p239_p2), %v780_v8  ;;  %v788_v18 = vpack.c.bf16 (!%p239_p2), %v513_v17, %v512_v16  ;;  %v515_v33 = vld [vmem:[%s942_s5 + $0x18] sm:$0xff] (!%p239_p2)  ;;  %v694_v35 = vld [vmem:[%s941_s4] ss:$0 sm:$0xff] (!%p239_p2) }
   0xa   : > { %777 = vmatprep.subr.bf16.mxu0 (!%p239_p2), %v776_v7  ;;  %783 = vmatpush3.bf16.msra.mxu1 (!%p239_p2), %v780_v8  ;;  %v792_v34 = vpack.c.bf16 (!%p239_p2), %v515_v33, %v514_v32  ;;  %v699_v48 = vld [vmem:[%s943_s6] ss:$0 sm:$0xff] (!%p239_p2) }
   0xb   : > { %785 = vmatprep.subr.bf16.mxu1 (!%p239_p2), %v784_v15 }
   0xd   : > { %s946_s9 = smov (!%p271_p3, %s685_s9), 7  ;;  %779 = vmatpush3.bf16.msra.mxu0 %v776_v7 }
   0xe   : > { %s686_s16 = sshll.u32 %s946_s9, 3  ;;  %787 = vmatpush3.bf16.msra.mxu1 %v784_v15  ;;  %789 = vmatprep.subr.bf16.mxu0 %v788_v18 }
   0xf   : > { %s274_s19 = scalar_lea.vmem %s937_s0, %s686_s16  ;;  %796 = vmatprep.subr.bf16.mxu1 %v788_v18  ;;  %s280_s20 = scalar_lea.vmem %s944_s7, %s686_s16 }
  0x10   : > { %v285_v9 = vld [vmem:[%s274_s19] sm:$0xff]  ;;  %v286_v10 = vld [vmem:[%s274_s19 + $0x8] sm:$0xff]  ;;  %v287_v11 = vld [vmem:[%s274_s19 + $0x10] sm:$0xff] }
  0x11   : > { %738 = vmatprep.mubr.msk.f32.mxu0 %vm299_vm0, %v285_v9  ;;  %v288_v12 = vld [vmem:[%s274_s19 + $0x18] sm:$0xff] }
  0x12   : > { %739 = vmatmul.mubr.msk.f32.vlgmr.msra.gmra.mrb[0].mxu0 %vm299_vm0, %v286_v10 }
  0x13   : > { %741 = vmatprep.mubr.msk.f32.mxu0 %vm299_vm0, %v287_v11  ;;  %791 = vmatpush3.bf16.msra.mxu0 %v788_v18 }
  0x14   : > { %793 = vmatprep.subr.bf16.mxu0 %v792_v34 }
  0x16   : > { %742 = vmatmul.mubr.msk.f32.gmra.mrb[2].mxu0 %vm299_vm0, %v288_v12 }
  0x17   : > { %795 = vmatpush3.bf16.msra.mxu0 %v792_v34 }
  0xe5   : > { %v740_v20 = vpop.f32.mrb[0].mxu0 }
  0xe6   : > { %v384_v21 = vadd.f32 %v740_v20, %v689_v19  ;;  %v378_v22 = vpop.f32.mrb[1].mxu0 }
  0xe7   : > { %v379_v23 = vadd.f32 %v689_v19, %v378_v22 }
  0xe8   : > { %v398_v26 = vmax.f32 %v384_v21, 0.0 }
  0xe9   : > { %v397_v24 = vmax.f32 %v379_v23, 0.0  ;;  %v743_v25 = vpop.f32.mrb[2].mxu0 }
  0xea   : > { %v394_v27 = vadd.f32 %v743_v25, %v689_v19  ;;  %v388_v28 = vpop.f32.mrb[3].mxu0 }
  0xeb   : > { %v389_v29 = vadd.f32 %v689_v19, %v388_v28  ;;  %752 = vmatprep.mubr.msk.f32.mxu1 %vm299_vm0, %v397_v24 }
  0xec   : > { %753 = vmatmul.mubr.msk.f32.vlgmr.msra.gmra.mrb[0].mxu1 %vm299_vm0, %v398_v26  ;;  %v400_v31 = vmax.f32 %v394_v27, 0.0 }
  0xed   : > { %v399_v30 = vmax.f32 %v389_v29, 0.0  ;;  %798 = vmatpush3.bf16.msra.mxu1 %v788_v18 }
  0xee   : > { %797 = vmatprep.subr.bf16.mxu1 %v792_v34 }
  0xef   : > { %755 = vmatprep.mubr.msk.f32.mxu1 %vm299_vm0, %v399_v30 }
  0xf0   : > { %756 = vmatmul.mubr.msk.f32.gmra.mrb[2].mxu1 %vm299_vm0, %v400_v31 }
  0xf1   : > { %799 = vmatpush3.bf16.msra.mxu1 %v792_v34 }
 0x1bf   : > { %v754_v36 = vpop.f32.mrb[0].mxu1 }
 0x1c0   : > { %v495_v37 = vadd.f32 %v754_v36, %v694_v35  ;;  %v489_v38 = vpop.f32.mrb[1].mxu1 }
 0x1c1   : > { %v490_v39 = vadd.f32 %v694_v35, %v489_v38 }
 0x1c2   : > { %v509_v42 = vmax.f32 %v495_v37, 0.0 }
 0x1c3   : > { %v508_v40 = vmax.f32 %v490_v39, 0.0  ;;  %v757_v41 = vpop.f32.mrb[2].mxu1 }
 0x1c4   : > { %v505_v43 = vadd.f32 %v757_v41, %v694_v35  ;;  %v499_v44 = vpop.f32.mrb[3].mxu1 }
 0x1c5   : > { %v500_v45 = vadd.f32 %v694_v35, %v499_v44  ;;  %766 = vmatprep.mubr.msk.f32.mxu0 %vm299_vm0, %v508_v40 }
 0x1c6   : > { %767 = vmatmul.mubr.msk.f32.vlgmr.msra.gmra.mrb[4].mxu0 %vm299_vm0, %v509_v42  ;;  %v511_v47 = vmax.f32 %v505_v43, 0.0 }
 0x1c7   : > { %v510_v46 = vmax.f32 %v500_v45, 0.0 }
 0x1c9   : > { %769 = vmatprep.mubr.msk.f32.mxu1 %vm299_vm0, %v510_v46 }
 0x1ca   : > { %770 = vmatmul.mubr.msk.f32.vlgmr.msra.gmra.mrb[4].mxu1 %vm299_vm0, %v511_v47 }
 0x299   : > { %v768_v49 = vpop.f32.mrb[4].mxu0 }
 0x29a   : > { %v600_v50 = vpop.f32.mrb[5].mxu0  ;;  %v606_v52 = vadd.f32 %v768_v49, %v699_v48 }
 0x29b   : > { %v601_v51 = vadd.f32 %v699_v48, %v600_v50 }
 0x29c   : > { %621 = vst.msk [vmem:[%s280_s20 + $0x8] sm:$0xff] %vm619_vm1, %v606_v52 }
 0x29d   : > { %620 = vst.msk [vmem:[%s280_s20] sm:$0xff] %vm619_vm1, %v601_v51  ;;  %v771_v53 = vpop.f32.mrb[4].mxu1 }
 0x29e   : > { %v610_v54 = vpop.f32.mrb[5].mxu1  ;;  %v616_v56 = vadd.f32 %v771_v53, %v699_v48 }
 0x29f   : > { %v611_v55 = vadd.f32 %v699_v48, %v610_v54 }
 0x2a0   : > { %623 = vst.msk [vmem:[%s280_s20 + $0x18] sm:$0xff] %vm619_vm1, %v616_v56 }
 0x2a1   : > { %622 = vst.msk [vmem:[%s280_s20 + $0x10] sm:$0xff] %vm619_vm1, %v611_v55 }
 0x2a2 PF: > { %s17_s24 = sadd.s32 1, %s814_s24  }
 0x2a3   : > { %p14_p4 = scmp.ge.s32.totalorder %s17_s24, 4  }
 0x2a5   :  { %16 = sbr.rel (!%p14_p4) target bundleno = 1 (0x1), region = 78 }

</bundles_post_ra>
